<compile_context>
chip_gen: v7x
topology: tpu7x:2x2x1
jax: 0.10.0
libtpu: 0.0.40
codegen_flags: <defaults>
</compile_context>

<pallas_src>
import jax
import jax.numpy as jnp
from jax import lax
from jax.experimental import pallas as pl
from jax.experimental.pallas import tpu as pltpu


# ---------------------------------------------------------------------------
# Kernel
# ---------------------------------------------------------------------------
def _kernel(xcol_ref, w1_ref, sh1_ref, w2aug_ref, sh2_ref, w3z_ref, b3_ref,
            o_ref):
    # xcol_ref : (9C, TILE)   bf16  im2col'd padded input, channels-first,
    #                               batch collapsed onto the lane axis
    # w1_ref   : (C, 9C)      bf16  conv1 weight with bn1 scale folded in
    # sh1_ref  : (C, 1)       f32   bn1 shift
    # w2aug_ref: (C2+1, C)    bf16  rows[:C2]=conv2 w * bn2 scale, row C2=w3_y
    # sh2_ref  : (C2, 1)      f32   bn2 shift
    # w3z_ref  : (C2, 1)      f32   conv3 weight, z-part of cat([z, y])
    # b3_ref   : (1,)         f32   conv3 bias (SMEM scalar)
    # o_ref    : (1, TILE)    f32   sigmoid output
    c2 = sh2_ref.shape[0]

    # conv1 (3x3, pad 1) as one im2col MXU matmul; bn1 scale already folded.
    y = jnp.dot(w1_ref[...], xcol_ref[...],
                preferred_element_type=jnp.float32)
    y = y + sh1_ref[...]                                  # bn1 shift
    y = jnp.maximum(y, 0.2 * y)                           # LeakyReLU(0.2)

    # conv2 (1x1, C -> C2) fused with conv3's y-branch (extra row C2).
    zy = jnp.dot(w2aug_ref[...], y.astype(jnp.bfloat16),
                 preferred_element_type=jnp.float32)      # (C2+1, TILE)
    z = zy[:c2] + sh2_ref[...]                            # bn2 shift
    z = jnp.maximum(z, 0.2 * z)                           # LeakyReLU(0.2)
    y_logit = zy[c2:c2 + 1]                               # (1, TILE) y-branch

    # conv3 z-branch: tiny VPU broadcast-mul + sublane reduce over C2 rows.
    logit = (jnp.sum(z * w3z_ref[...], axis=0, keepdims=True)
             + y_logit + b3_ref[0])                       # (1, TILE)

    # Numerically safe sigmoid: clamp so exp never overflows to inf before
    # the approximate EUP reciprocal.  Lane-dense full-width store.
    logit = jnp.maximum(logit, -60.0)
    o_ref[...] = pl.reciprocal(1.0 + jnp.exp(-logit), approx=True)


# ---------------------------------------------------------------------------
# Wrapper
# ---------------------------------------------------------------------------
def _pick_lane_tile(total, max_tile=2048):
    """Largest multiple-of-128 divisor of `total` (<= max_tile), preferring a
    tile that leaves >= 2 grid steps so both v7x TensorCores get work."""
    candidates = [t for t in range(128, min(total, max_tile) + 1, 128)
                  if total % t == 0]
    if not candidates:
        return total                      # fall back to a single full block
    two_step = [t for t in candidates if total // t >= 2]
    return max(two_step) if two_step else max(candidates)


def cbr3cbr1c1_res_confidence(x_nchw, kparams, max_lane_tile=2048):
    """x_nchw: (N, C, H, W) float32 -> (N, 1, H, W) float32."""
    w1cf, sh1, w2aug, sh2, w3z, b3 = kparams
    N, C, H, W = x_nchw.shape
    C2 = sh2.shape[0]
    HW = H * W
    K9 = 9 * C
    total = N * HW

    # Channels-first im2col in bf16 (cast first: halves wrapper HBM traffic):
    #   xcol[(dy*3+dx)*C + cin, n*HW + h*W + w] = xpad[n, cin, h+dy, w+dx]
    # Per-image padding is applied before collapsing the batch, so columns
    # never mix pixels from different images.
    xpad = jnp.pad(x_nchw.astype(jnp.bfloat16),
                   ((0, 0), (0, 0), (1, 1), (1, 1)))
    patches = [xpad[:, :, dy:dy + H, dx:dx + W]
               for dy in range(3) for dx in range(3)]     # 9 x (N, C, H, W)
    xcol = jnp.stack(patches, axis=1).reshape(N, K9, HW)  # (N, 9C, HW)
    xcol = jnp.moveaxis(xcol, 0, 1).reshape(K9, total)    # (9C, N*HW)

    tile = _pick_lane_tile(total, max_lane_tile)
    grid = (total // tile,)

    out = pl.pallas_call(
        _kernel,
        out_shape=jax.ShapeDtypeStruct((1, total), jnp.float32),
        grid_spec=pltpu.PrefetchScalarGridSpec(
            num_scalar_prefetch=0,
            grid=grid,
            in_specs=[
                pl.BlockSpec((K9, tile), lambda t: (0, t)),       # im2col tile
                pl.BlockSpec((C, K9), lambda t: (0, 0)),          # conv1 w
                pl.BlockSpec((C, 1), lambda t: (0, 0)),           # bn1 shift
                pl.BlockSpec((C2 + 1, C), lambda t: (0, 0)),      # conv2+w3y
                pl.BlockSpec((C2, 1), lambda t: (0, 0)),          # bn2 shift
                pl.BlockSpec((C2, 1), lambda t: (0, 0)),          # conv3 w, z
                pl.BlockSpec(memory_space=pltpu.MemorySpace.SMEM),  # conv3 b
            ],
            out_specs=pl.BlockSpec((1, tile), lambda t: (0, t)),
        ),
        compiler_params=pltpu.CompilerParams(
            dimension_semantics=("parallel",),
            vmem_limit_bytes=32 * 1024 * 1024,
        ),
    )(xcol, w1cf, sh1, w2aug, sh2, w3z, b3)

    return out.reshape(N, 1, H, W)


# ---------------------------------------------------------------------------
# Parameter construction (PyTorch init_weights semantics) and folding
# ---------------------------------------------------------------------------
def init_torch_params(key, C):
    """PyTorch-layout params: conv ~ N(0, 0.02), bias = 0, BN gamma=1/beta=0,
    eval-mode running stats mean=0, var=1."""
    C2 = C // 2
    k1, k2, k3 = jax.random.split(key, 3)
    w1 = 0.02 * jax.random.normal(k1, (C, C, 3, 3), jnp.float32)      # OIHW
    w2 = 0.02 * jax.random.normal(k2, (C2, C, 1, 1), jnp.float32)
    w3 = 0.02 * jax.random.normal(k3, (1, C + C2, 1, 1), jnp.float32)
    b3 = jnp.zeros((1,), jnp.float32)

    def bn(c):
        return dict(gamma=jnp.ones((c,), jnp.float32),
                    beta=jnp.zeros((c,), jnp.float32),
                    mean=jnp.zeros((c,), jnp.float32),
                    var=jnp.ones((c,), jnp.float32))

    return (w1, bn(C), w2, bn(C2), w3, b3)


def prepare_kernel_params(w1, bn1, w2, bn2, w3, b3, eps=1e-5):
    """Fold eval-mode BN scales into conv weights; channels-first layouts;
    append conv3's y-branch weights as an extra row of the conv2 matmul."""
    C = w1.shape[0]
    C2 = w2.shape[0]

    s1 = bn1["gamma"] / jnp.sqrt(bn1["var"] + eps)
    sh1 = bn1["beta"] - bn1["mean"] * s1
    s2 = bn2["gamma"] / jnp.sqrt(bn2["var"] + eps)
    sh2 = bn2["beta"] - bn2["mean"] * s2

    # conv1: (Cout, Cin, 3, 3) -> (Cout, 9*Cin), index (dy*3+dx)*C + cin,
    # matching the wrapper's im2col ordering; bn1 scale folded per out-channel.
    w1cf = jnp.transpose(w1, (0, 2, 3, 1)).reshape(C, 9 * C) * s1[:, None]

    # conv2: (C2, C, 1, 1) -> (C2, C); bn2 scale folded.
    w2cf = w2[:, :, 0, 0] * s2[:, None]
    # conv3 acts on cat([z, y]): first C2 weights hit z, last C hit y.
    w3flat = w3[0, :, 0, 0]
    w3z = w3flat[:C2].reshape(C2, 1).astype(jnp.float32)
    w3y_row = w3flat[C2:].reshape(1, C)                   # y-branch -> row C2
    w2aug = jnp.concatenate([w2cf, w3y_row], axis=0)      # (C2+1, C)

    return (w1cf.astype(jnp.bfloat16), sh1.reshape(C, 1).astype(jnp.float32),
            w2aug.astype(jnp.bfloat16), sh2.reshape(C2, 1).astype(jnp.float32),
            w3z, b3.astype(jnp.float32))


# ---------------------------------------------------------------------------
# Pure-JAX reference (eval-mode BN) for correctness check
# ---------------------------------------------------------------------------
def _reference_forward(x, torch_params, eps=1e-5):
    w1, bn1, w2, bn2, w3, b3 = torch_params
    dn = ("NCHW", "OIHW", "NCHW")

    def bn_eval(h, p):
        s = p["gamma"] / jnp.sqrt(p["var"] + eps)
        return (h * s[None, :, None, None]
                + (p["beta"] - p["mean"] * s)[None, :, None, None])

    h = lax.conv_general_dilated(x, w1, (1, 1), ((1, 1), (1, 1)),
                                 dimension_numbers=dn)
    y = bn_eval(h, bn1)
    y = jnp.where(y > 0, y, 0.2 * y)
    h = lax.conv_general_dilated(y, w2, (1, 1), ((0, 0), (0, 0)),
                                 dimension_numbers=dn)
    z = bn_eval(h, bn2)
    z = jnp.where(z > 0, z, 0.2 * z)
    cat = jnp.concatenate([z, y], axis=1)
    logit = lax.conv_general_dilated(cat, w3, (1, 1), ((0, 0), (0, 0)),
                                     dimension_numbers=dn)
    logit = logit + b3[None, :, None, None]
    return jax.nn.sigmoid(logit)


if __name__ == "__main__":
    key = jax.random.PRNGKey(0)
    kx, kp = jax.random.split(key)
    N, C, H, W = 2, 4, 16, 16

    x = jax.random.normal(kx, (N, C, H, W), jnp.float32)
    torch_params = init_torch_params(kp, C)
    kparams = prepare_kernel_params(*torch_params)

    out = cbr3cbr1c1_res_confidence(x, kparams)
    jax.block_until_ready(out)
    assert out.shape == (N, 1, H, W), out.shape

    ref = _reference_forward(x, torch_params)
    max_err = float(jnp.max(jnp.abs(out - ref)))
    # bf16 matmul operands + approx reciprocal -> small, bounded drift vs f32.
    assert max_err < 1e-2, max_err
    print("KERNEL_OK")
</pallas_src>

<mosaic_0001>
module attributes {stable_mosaic.version = 11 : i64} {
  func.func @_kernel(%arg0: i32, %arg1: memref<36x256xbf16, #tpu.memory_space<vmem>>, %arg2: memref<4x36xbf16, #tpu.memory_space<vmem>>, %arg3: memref<4x1xf32, #tpu.memory_space<vmem>>, %arg4: memref<3x4xbf16, #tpu.memory_space<vmem>>, %arg5: memref<2x1xf32, #tpu.memory_space<vmem>>, %arg6: memref<2x1xf32, #tpu.memory_space<vmem>>, %arg7: memref<1xf32, #tpu.memory_space<smem>>, %arg8: memref<1x256xf32, #tpu.memory_space<vmem>>) attributes {dimension_semantics = [#tpu.dimension_semantics<parallel>], iteration_bounds = array<i64: 2>, scalar_prefetch = 0 : i64, scratch_operands = 0 : i64, tpu.core_type = #tpu.core_type<tc>, window_params = [{transform_indices = @transform_0, window_bounds = array<i64: 36, 256>}, {pipeline_mode = #tpu.pipeline_mode<synchronous>, transform_indices = @transform_1, window_bounds = array<i64: 4, 36>}, {pipeline_mode = #tpu.pipeline_mode<synchronous>, transform_indices = @transform_2, window_bounds = array<i64: 4, 1>}, {pipeline_mode = #tpu.pipeline_mode<synchronous>, transform_indices = @transform_3, window_bounds = array<i64: 3, 4>}, {pipeline_mode = #tpu.pipeline_mode<synchronous>, transform_indices = @transform_4, window_bounds = array<i64: 2, 1>}, {pipeline_mode = #tpu.pipeline_mode<synchronous>, transform_indices = @transform_5, window_bounds = array<i64: 2, 1>}, {transform_indices = @transform_6, window_bounds = array<i64: 1>}, {transform_indices = @transform_7, window_bounds = array<i64: 1, 256>}]} {
    %c0 = arith.constant 0 : index
    %c0_0 = arith.constant 0 : index
    %0 = vector.load %arg2[%c0, %c0_0] : memref<4x36xbf16, #tpu.memory_space<vmem>>, vector<4x36xbf16>
    %c0_1 = arith.constant 0 : index
    %c0_2 = arith.constant 0 : index
    %1 = vector.load %arg1[%c0_1, %c0_2] : memref<36x256xbf16, #tpu.memory_space<vmem>>, vector<36x256xbf16>
    %cst = arith.constant dense<0.000000e+00> : vector<4x256xf32>
    %2 = tpu.matmul %0, %1, %cst {dimension_numbers = #tpu.dot_dimension_numbers<[1], [0], [0], [1], [0, 0, 1, 1], [], []>} : vector<4x36xbf16>, vector<36x256xbf16>, vector<4x256xf32> -> vector<4x256xf32>
    %c0_3 = arith.constant 0 : index
    %c0_4 = arith.constant 0 : index
    %3 = vector.load %arg3[%c0_3, %c0_4] : memref<4x1xf32, #tpu.memory_space<vmem>>, vector<4x1xf32>
    %4 = vector.broadcast %3 : vector<4x1xf32> to vector<4x256xf32>
    %5 = arith.addf %2, %4 : vector<4x256xf32>
    %cst_5 = arith.constant 2.000000e-01 : f32
    %6 = vector.broadcast %cst_5 : f32 to vector<4x256xf32>
    %7 = arith.mulf %6, %5 : vector<4x256xf32>
    %8 = arith.maximumf %5, %7 : vector<4x256xf32>
    %c0_6 = arith.constant 0 : index
    %c0_7 = arith.constant 0 : index
    %9 = vector.load %arg4[%c0_6, %c0_7] : memref<3x4xbf16, #tpu.memory_space<vmem>>, vector<3x4xbf16>
    %10 = arith.truncf %8 : vector<4x256xf32> to vector<4x256xbf16>
    %cst_8 = arith.constant dense<0.000000e+00> : vector<3x256xf32>
    %11 = tpu.matmul %9, %10, %cst_8 {dimension_numbers = #tpu.dot_dimension_numbers<[1], [0], [0], [1], [0, 0, 1, 1], [], []>} : vector<3x4xbf16>, vector<4x256xbf16>, vector<3x256xf32> -> vector<3x256xf32>
    %12 = vector.extract_strided_slice %11 {offsets = [0, 0], sizes = [2, 256], strides = [1, 1]} : vector<3x256xf32> to vector<2x256xf32>
    %c0_9 = arith.constant 0 : index
    %c0_10 = arith.constant 0 : index
    %13 = vector.load %arg5[%c0_9, %c0_10] : memref<2x1xf32, #tpu.memory_space<vmem>>, vector<2x1xf32>
    %14 = vector.broadcast %13 : vector<2x1xf32> to vector<2x256xf32>
    %15 = arith.addf %12, %14 : vector<2x256xf32>
    %cst_11 = arith.constant 2.000000e-01 : f32
    %16 = vector.broadcast %cst_11 : f32 to vector<2x256xf32>
    %17 = arith.mulf %16, %15 : vector<2x256xf32>
    %18 = arith.maximumf %15, %17 : vector<2x256xf32>
    %19 = vector.extract_strided_slice %11 {offsets = [2, 0], sizes = [1, 256], strides = [1, 1]} : vector<3x256xf32> to vector<1x256xf32>
    %c0_12 = arith.constant 0 : index
    %c0_13 = arith.constant 0 : index
    %20 = vector.load %arg6[%c0_12, %c0_13] : memref<2x1xf32, #tpu.memory_space<vmem>>, vector<2x1xf32>
    %21 = vector.broadcast %20 : vector<2x1xf32> to vector<2x256xf32>
    %22 = arith.mulf %18, %21 : vector<2x256xf32>
    %cst_14 = arith.constant dense<0.000000e+00> : vector<256xf32>
    %23 = vector.multi_reduction <add>, %22, %cst_14 [0] : vector<2x256xf32> to vector<256xf32>
    %24 = vector.shape_cast %23 : vector<256xf32> to vector<1x256xf32>
    %25 = arith.addf %24, %19 : vector<1x256xf32>
    %c0_15 = arith.constant 0 : index
    %26 = memref.load %arg7[%c0_15] : memref<1xf32, #tpu.memory_space<smem>>
    %27 = vector.broadcast %26 : f32 to vector<1x256xf32>
    %28 = arith.addf %25, %27 : vector<1x256xf32>
    %cst_16 = arith.constant -6.000000e+01 : f32
    %29 = vector.broadcast %cst_16 : f32 to vector<1x256xf32>
    %30 = arith.maximumf %28, %29 : vector<1x256xf32>
    %cst_17 = arith.constant 0.000000e+00 : f32
    %31 = vector.broadcast %cst_17 : f32 to vector<1x256xf32>
    %32 = arith.subf %31, %30 : vector<1x256xf32>
    %33 = math.exp %32 : vector<1x256xf32>
    %cst_18 = arith.constant 1.000000e+00 : f32
    %34 = vector.broadcast %cst_18 : f32 to vector<1x256xf32>
    %35 = arith.addf %34, %33 : vector<1x256xf32>
    %36 = tpu.reciprocal %35 {approx = true} : vector<1x256xf32> -> vector<1x256xf32>
    %c0_19 = arith.constant 0 : index
    %c0_20 = arith.constant 0 : index
    %37 = vector.load %arg8[%c0_19, %c0_20] : memref<1x256xf32, #tpu.memory_space<vmem>>, vector<1x256xf32>
    tpu.vector_store %arg8[%c0_19, %c0_20], %36 {strides = array<i32>} : memref<1x256xf32, #tpu.memory_space<vmem>>, vector<1x256xf32>,
    return
  }
  func.func @transform_0(%arg0: i32) -> (i32, i32) {
    %c0_i32 = arith.constant 0 : i32
    %c0_i32_0 = arith.constant 0 : i32
    return %c0_i32, %arg0 : i32, i32
  }
  func.func @transform_1(%arg0: i32) -> (i32, i32) {
    %c0_i32 = arith.constant 0 : i32
    %c0_i32_0 = arith.constant 0 : i32
    %c0_i32_1 = arith.constant 0 : i32
    return %c0_i32, %c0_i32_0 : i32, i32
  }
  func.func @transform_2(%arg0: i32) -> (i32, i32) {
    %c0_i32 = arith.constant 0 : i32
    %c0_i32_0 = arith.constant 0 : i32
    %c0_i32_1 = arith.constant 0 : i32
    return %c0_i32, %c0_i32_0 : i32, i32
  }
  func.func @transform_3(%arg0: i32) -> (i32, i32) {
    %c0_i32 = arith.constant 0 : i32
    %c0_i32_0 = arith.constant 0 : i32
    %c0_i32_1 = arith.constant 0 : i32
    return %c0_i32, %c0_i32_0 : i32, i32
  }
  func.func @transform_4(%arg0: i32) -> (i32, i32) {
    %c0_i32 = arith.constant 0 : i32
    %c0_i32_0 = arith.constant 0 : i32
    %c0_i32_1 = arith.constant 0 : i32
    return %c0_i32, %c0_i32_0 : i32, i32
  }
  func.func @transform_5(%arg0: i32) -> (i32, i32) {
    %c0_i32 = arith.constant 0 : i32
    %c0_i32_0 = arith.constant 0 : i32
    %c0_i32_1 = arith.constant 0 : i32
    return %c0_i32, %c0_i32_0 : i32, i32
  }
  func.func @transform_6(%arg0: i32) -> i32 {
    %c0_i32 = arith.constant 0 : i32
    %c0_i32_0 = arith.constant 0 : i32
    return %c0_i32 : i32
  }
  func.func @transform_7(%arg0: i32) -> (i32, i32) {
    %c0_i32 = arith.constant 0 : i32
    %c0_i32_0 = arith.constant 0 : i32
    return %c0_i32, %arg0 : i32, i32
  }
}

</mosaic_0001>

<bundles_post_ra>
// kernel: tpu_custom_call.1
= control target key start
LH: loop header
LB: loop body
LE: loop exit
PB: predicated region body
PF: predicated region fallthrough
CT: control target
= control target key end

     0   :  { %s1030_s0 = inlined_call_operand.hbm [shape: bf16[36,512], index: 0, kind: input, shape index: {}]   ;;  %s1031_s1 = inlined_call_operand.vmem [shape: bf16[4,36], index: 1, kind: input, shape index: {}]   ;;  %s1032_s2 = inlined_call_operand.vmem [shape: f32[4,1], index: 2, kind: input, shape index: {}]   ;;  %s1033_s3 = inlined_call_operand.vmem [shape: bf16[3,4], index: 3, kind: input, shape index: {}]   ;;  %s1034_s4 = inlined_call_operand.vmem [shape: f32[2,1], index: 4, kind: input, shape index: {}]   ;;  %s1035_s5 = inlined_call_operand.vmem [shape: f32[2,1], index: 5, kind: input, shape index: {}]   ;;  %s1036_s6 = inlined_call_operand.<no memory space> [shape: f32[1], index: 6, kind: input, shape index: {}]   ;;  %s1037_s7 = inlined_call_operand.hbm [shape: f32[1,512], index: 7, kind: output, shape index: {}]  }
   0x1   :  { %12 = sst [smem:[#allocation2]] %s1036_s6 }
   0x2   :  { %13 = vsyncpa [#allocation4], 0 }
   0x3   :  { %15 = vsyncpa [#allocation4 + $0x1], 0 }
   0x4   :  { %16 = vsyncpa [#allocation5], 0 }
   0x5   :  { %18 = vsyncpa [#allocation5 + $0x1], 0  ;;  %s852_s26 = smov 0   ;;  %s854_s27 = smov 0  }
   0x6   :  { %s856_s28 = smov 0   ;;  %s858_s29 = smov 0  }
   0x7 LB: > { %s873_s6 = sadd.s32 4294967295, %s800_s29   ;;  %s609_s30 = sadd.s32 4294967294, %s800_s29   ;;  %s800_s29 = sphi %s858_s29, %s1050_s29   ;;  %s796_s28 = sphi %s856_s28, %s1049_s28   ;;  %s792_s27 = sphi %s854_s27, %s1048_s27   ;;  %s788_s26 = sphi %s852_s26, %s1047_s26  }
   0x8   : > { %s877_s8 = sadd.s32 1, %s800_s29   ;;  %s31_s9 = sadd.s32 1, %s796_s28 }
   0x9   : > { %s28_s10 = ssub.s32 %s800_s29, %s877_s8  ;;  %p38_p0 = scmp.ne.s32.totalorder %s796_s28, %s792_s27 }
   0xa   : > { %p29_p1 = scmp.eq.s32.totalorder %s28_s10, 0  ;;  %p39_p2 = scmp.eq.s32.totalorder %s800_s29, 0 }
   0xb   : > { %p44_p3 = scmp.ne.s32.totalorder %s792_s27, %s788_s26  ;;  %p45_p4 = scmp.eq.s32.totalorder %s873_s6, 0 }
   0xc   : > { %s889_s11 = scalar_select %p29_p1, %s796_s28, %s31_s9  }
   0xd   : > { %p40_p5 = por %p39_p2, %p38_p0  ;;  %p891_p6 = por %p45_p4, %p44_p3 }
   0xe   : > { %p194_p7 = scmp.eq.s32.totalorder %s873_s6, 1  ;;  %p200_p8 = scmp.eq.s32.totalorder %s609_s30, 1 }
   0xf   : > { %p647_p10 = scmp.lt.s32.totalorder %s800_s29, 2  ;;  %s238_s15 = sand.u32 1, %s796_s28  }
  0x10   : > { %p898_p11 = por %p194_p7, %p38_p0  ;;  %p902_p12 = por %p200_p8, %p44_p3 }
  0x11   : > { %s631_s16 = sshll.u32 %s800_s29, 7  ;;  %s633_s17 = smul.u32 40, %s238_s15 }
  0x12   : > { %s1040_s13 = scalar_select %p898_p11, 1, 0 }
  0x13   : > { %s1041_s14 = scalar_select %p902_p12, 1, 0 }
  0x14   : > { %s911_s20 = scalar_lea.hbm %s1030_s0, %s631_s16  ;;  %p913_p13 = pnand %p647_p10, %p40_p5 }
  0x15   : > { %s242_s22 = scalar_lea.vmem [#allocation3], %s633_s17  ;;  %s920_s24 = scalar_lea.sflag [#allocation4], %s238_s15 }
  0x16   : > { %s249_s23 = sshll.u32 %s242_s22, 4  ;;  %s704_s25 = scalar_lea.hbm %s911_s20, 640  ;;  %s917_s23 = int_to_ptr.vmem [resolvable:$true] %s249_s23 }
  0x17   : > { %p705_p1 = scmp.ne.s32.totalorder %s911_s20, %s704_s25  ;;  %p706_p2 = pneg %p913_p13 }
  0x18   : > { %s709_s10 = scalar_lea.hbm %s1030_s0, 1280  ;;  %p710_p5 = scmp.lt.u32.totalorder %s911_s20, %s1030_s0 }
  0x19   : > { %p707_p3 = pnand %p706_p2, %p705_p1  ;;  %p711_p7 = scmp.lt.u32.totalorder %s709_s10, %s704_s25 }
  0x1a   : > { %p713_p10 = scmp.lt.u32.totalorder %s704_s25, %s911_s20 }
  0x1b   : > { %p708_p4 = pneg %p707_p3  ;;  %p712_p8 = por %p711_p7, %p710_p5 }
  0x1d   : > { %p714_p9 = por %p713_p10, %p712_p8 }
  0x1f   : > { %p715_p0 = pnand %p714_p9, %p708_p4 }
  0x21   : > { %718 = shalt.err (!%p715_p0)
}
  0x22   : > { %s719_s15 = scalar_lea.vmem %s917_s23, 640  ;;  %s802_s18 = smov [#allocation3]  }
  0x23   : > { %p720_p1 = scmp.ne.s32.totalorder %s917_s23, %s719_s15  ;;  %s724_s19 = sshll.u32 %s802_s18, 4  ;;  %s725_s19 = int_to_ptr.vmem [resolvable:$false] %s724_s19 }
  0x24   : > { %s726_s22 = scalar_lea.vmem %s725_s19, 1280  ;;  %p727_p11 = scmp.lt.s32.totalorder %s917_s23, %s725_s19 }
  0x25   : > { %p722_p3 = pnand %p720_p1, %p706_p2  ;;  %p728_p5 = scmp.lt.s32.totalorder %s726_s22, %s719_s15 }
  0x27   : > { %p723_p12 = pneg %p722_p3  ;;  %p729_p7 = por %p728_p5, %p727_p11 }
  0x29   : > { %p730_p8 = pnand %p729_p7, %p723_p12 }
  0x2b   : > { %733 = shalt.err (!%p730_p8)
}
  0x2c   : > { %s803_s25 = smov 256   ;;  %s804_s30 = smov 128  }
  0x2d   : > { %s805_s9 = smov 8   ;;  %p257_p9 = scmp.lt.s32.totalorder %s800_s29, 3 }
  0x2e   : > { %642 = dma.hbm_to_vmem [thread:$0]  (!%p913_p13), %s911_s20, 640, %s917_s23, %s920_s24, %s803_s25, %s804_s30, %s805_s9  }
  0x2f   : > { %p1043_p0 = scmp.ge.s32.totalorder %s800_s29, 1 }
  0x31   : > { %p258_p2 = pnand %p1043_p0, %p257_p9 }
  0x32   : > { %s952_s10 = sand.u32 (!%p258_p2), 1, %s792_s27  }
  0x33   : > { %261 = sbr.rel (%p258_p2) target bundleno = 589 (0x24d), region = 48  ;;  %s264_s17 = scalar_lea.sflag (!%p258_p2), [#allocation4], %s952_s10 }
  0x34   : > { %s634_s16 = smul.u32 (!%p258_p2), 40, %s952_s10 }
  0x36   : > { %s267_s15 = scalar_lea.vmem (!%p258_p2), [#allocation3], %s634_s16 }
  0x3a   : > { %779 = dma.done.wait (%p891_p6), %s264_s17, 640  }
  0x3b   : > { %781 = vsyncadd (%p891_p6), %s264_s17, 4294966656  ;;  %v806_v0 = vmov 0   ;;  %v688_v1 = vld [vmem:[%s267_s15 + $0x4] ss:$8 sps:$4 sm:$0xff]   ;;  %v690_v2 = vld [vmem:[%s267_s15] ss:$8 sps:$4 sm:$0xff]  }
  0x3c   : > { %381 = vmatprep.mubr.bf16.mxu0 %v806_v0  ;;  %686 = vset.pattern.permute.xlu0 %v806_v0  ;;  %v691_v3 = vld [vmem:[%s267_s15 + $0x14] ss:$8 sps:$4 sm:$0xff]   ;;  %v306_v4 = vld [vmem:[%s267_s15 + $0x20] sm:$0x33]  ;;  %v693_v5 = vld [vmem:[%s267_s15 + $0x10] ss:$8 sps:$4 sm:$0xff]  }
  0x3d   : > { %439 = vmatprep.mubr.bf16.mxu1 %v806_v0  ;;  %687 = vset.pattern.permute.xlu1 %v806_v0  ;;  %v307_v6 = vld [vmem:[%s1032_s2] sm:$0xf]  ;;  %v621_v7 = vcombine.high %v306_v4, %v306_v4  ;;  %v620_v8 = vcombine.low %v306_v4, %v306_v4  ;;  %vm342_vm0 = vcmask 1041408   ;;  %vm338_vm1 = vcmask 293888   ;;  %s484_s9 = sld [smem:[#allocation2]]  ;;  %s615_s16 = sshll.u32 %s952_s10, 1 }
  0x3e   : > { %349 = vmatprep.subr.bf16.mxu0 %v688_v1  ;;  %310 = vperm.xlu0 %686, %v307_v6   ;;  %v448_v9 = vld [vmem:[%s1034_s4] sm:$0x3]  ;;  %vm397_vm2 = vcmask 31744   ;;  %s632_s17 = sshll.u32 %s873_s6, 5  ;;  %s297_s15 = scalar_lea.vmem [#allocation6], %s615_s16 }
  0x3f   : > { %350 = vmatpush1.bf16.msra.mxu0 %v690_v2  ;;  %v344_v10 = vsel %vm342_vm0, %v620_v8, 0  ;;  %v301_v11 = vld [vmem:[%s1031_s1] sm:$0x3]  ;;  %s539_s20 = sshll.u32 %s297_s15, 4  ;;  %s986_s23 = scalar_lea.hbm %s1037_s7, %s632_s17  ;;  %s988_s20 = int_to_ptr.vmem [resolvable:$true] %s539_s20 }
  0x40   : > { %351 = vmatprep.subr.bf16.mxu0 %v691_v3  ;;  %v460_v12 = vld [vmem:[%s1035_s5] sm:$0x3]  ;;  %s525_s24 = scalar_lea.sflag [#allocation5], %s952_s10  ;;  %s734_s18 = scalar_lea.vmem %s988_s20, 32 }
  0x41   : > { %463 = vperm.xlu1 %687, %v460_v12   ;;  %v394_v27 = vld [vmem:[%s1033_s3] sm:$0x3]  ;;  %p735_p6 = scmp.ne.s32.totalorder %s988_s20, %s734_s18  ;;  %p1044_p11 = scmp.ne.s32.totalorder %s1040_s13, 0 }
  0x42   : > { %451 = vperm.xlu0 %686, %v448_v9   ;;  %v506_v9 = vlaneseq  ;;  %s808_s6 = smov [#allocation6]  }
  0x43   : > { %352 = vmatpush1.bf16.msra.mxu0 %v693_v5  ;;  %v485_v55 = vstv %s484_s9  ;;  %p736_p12 = pnand %p735_p6, %p1044_p11  ;;  %s738_s19 = sshll.u32 %s808_s6, 4  ;;  %s739_s19 = int_to_ptr.vmem [resolvable:$false] %s738_s19 }
  0x44   : > { %622 = vmatprep.subr.msk.bf16.mxu0 %vm342_vm0, %v621_v7  ;;  %v807_v7 = vmov 1966171168   ;;  %vm521_vm3 = vcmp.lt.s32.totalorder %v506_v9, 256  ;;  %s740_s22 = scalar_lea.vmem %s739_s19, 64  ;;  %p741_p4 = scmp.lt.s32.totalorder %s988_s20, %s739_s19 }
  0x45   : > { %v504_v8 = vunpack.c.l.s4 %v807_v7  ;;  %p737_p13 = pneg %p736_p12  ;;  %p742_p10 = scmp.lt.s32.totalorder %s740_s22, %s734_s18 }
  0x47   : > { %354 = vmatpush1.bf16.msra.mxu0 %v344_v10  ;;  %v505_v10 = vunpack.c.0.s8 %v504_v8  ;;  %p743_p1 = por %p742_p10, %p741_p4 }
  0x49   : > { %p744_p3 = pnand %p743_p1, %p737_p13 }
  0x4a   : > { %623 = vmatmul.mubr.msk.bf16.vlgmr.msra.gmra.mrb[0].mxu0 %vm338_vm1, %v301_v11  ;;  %v507_v11 = vshrl.u32 %v506_v9, 7 }
  0xbd   : > { %v311_v13 = vpop.permute.xlu0 %310 }
  0xc0   : > { %v464_v37 = vpop.permute.xlu1 %463 }
  0xc1   : > { %v452_v28 = vpop.permute.xlu0 %451 }
 0x11d   : > { %v383_v14 = vpop.f32.mrb[0].mxu0 }
 0x11e   : > { %v384_v15 = vadd.f32 %v383_v14, %v311_v13  ;;  %v385_v16 = vpop.f32.mrb[1].mxu0 }
 0x11f   : > { %v386_v17 = vadd.f32 %v385_v16, %v311_v13  ;;  %v387_v18 = vpop.f32.mrb[2].mxu0  ;;  %v508_v13 = vsub.s32 %v505_v10, %v507_v11 }
 0x120   : > { %v390_v19 = vmul.f32 0.2, %v384_v15  ;;  %v388_v20 = vpop.f32.mrb[3].mxu0 }
 0x121   : > { %v391_v21 = vmul.f32 0.2, %v386_v17 }
 0x122   : > { %v392_v22 = vmax.f32 %v384_v15, %v390_v19 }
 0x123   : > { %v393_v23 = vmax.f32 %v386_v17, %v391_v21 }
 0x124   : > { %v395_v24 = vpack.c.bf16 %v392_v22, %v392_v22 }
 0x125   : > { %v396_v25 = vpack.c.bf16 %v393_v23, %v393_v23 }
 0x126   : > { %v402_v26 = vsel %vm342_vm0, %v395_v24, 0 }
 0x127   : > { %624 = vmatprep.subr.msk.bf16.mxu1 %vm342_vm0, %v396_v25 }
 0x128   : > { %408 = vmatpush1.bf16.msra.mxu1 %v402_v26 }
 0x12b   : > { %625 = vmatmul.mubr.msk.bf16.vlgmr.msra.gmra.mrb[0].mxu1 %vm397_vm2, %v394_v27 }
 0x1fe   : > { %v441_v29 = vpop.f32.mrb[0].mxu1 }
 0x1ff   : > { %v454_v30 = vadd.f32 %v452_v28, %v441_v29  ;;  %v443_v31 = vpop.f32.mrb[1].mxu1 }
 0x200   : > { %v455_v32 = vadd.f32 %v452_v28, %v443_v31  ;;  %v445_v33 = vpop.f32.mrb[2].mxu1 }
 0x201   : > { %v456_v34 = vmul.f32 0.2, %v454_v30  ;;  %v446_v35 = vpop.f32.mrb[3].mxu1 }
 0x202   : > { %v457_v36 = vmul.f32 0.2, %v455_v32 }
 0x203   : > { %v458_v38 = vmax.f32 %v454_v30, %v456_v34 }
 0x204   : > { %v459_v39 = vmax.f32 %v455_v32, %v457_v36 }
 0x205   : > { %v466_v40 = vmul.f32 %v464_v37, %v458_v38 }
 0x206   : > { %v467_v41 = vmul.f32 %v464_v37, %v459_v39 }
 0x207   : > { %v468_v42 = vsel %vm342_vm0, %v466_v40, 0.0 }
 0x208   : > { %v469_v43 = vrot.slane %v468_v42, 4  ;;  %v475_v44 = vsel %vm342_vm0, %v467_v41, 0.0 }
 0x209   : > { %v476_v45 = vrot.slane %v475_v44, 4 }
 0x20a   : > { %v470_v46 = vadd.f32 %v469_v43, %v468_v42 }
 0x20b   : > { %v477_v47 = vadd.f32 %v476_v45, %v475_v44 }
 0x20c   : > { %v471_v48 = vrot.slane %v470_v46, 2 }
 0x20d   : > { %v478_v49 = vrot.slane %v477_v47, 2 }
 0x20e   : > { %v472_v50 = vadd.f32 %v471_v48, %v470_v46 }
 0x20f   : > { %v479_v51 = vadd.f32 %v478_v49, %v477_v47 }
 0x210   : > { %v473_v52 = vrot.slane %v472_v50, 1 }
 0x211   : > { %v480_v53 = vrot.slane %v479_v51, 1 }
 0x212   : > { %v474_v54 = vadd.f32 %v473_v52, %v472_v50 }
 0x213   : > { %v481_v56 = vadd.f32 %v480_v53, %v479_v51 }
 0x214   : > { %v482_v57 = vadd.f32 %v474_v54, %v441_v29 }
 0x215   : > { %v483_v58 = vadd.f32 %v481_v56, %v443_v31 }
 0x216   : > { %v486_v59 = vadd.f32 %v485_v55, %v482_v57 }
 0x217   : > { %v487_v60 = vadd.f32 %v485_v55, %v483_v58 }
 0x218   : > { %v488_v61 = vmax.f32 %v486_v59, -60.0 }
 0x219   : > { %v489_v62 = vmax.f32 %v487_v60, -60.0 }
 0x21a   : > { %v490_v63 = vsub.f32 0.0, %v488_v61 }
 0x21b   : > { %v491_v0 = vsub.f32 0.0, %v489_v62 }
 0x21c   : > { %v492_v1 = vmul.f32 1.442695, %v490_v63 }
 0x21d   : > { %v494_v2 = vmul.f32 1.442695, %v491_v0 }
 0x21e   : > { %696 = vpow2.f32 %v492_v1 }
 0x21f   : > { %698 = vpow2.f32 %v494_v2 }
 0x228   : > { %v697_v3 = vpop.eup %696 }
 0x229   : > { %v699_v4 = vpop.eup %698  ;;  %v496_v5 = vadd.f32 1.0, %v697_v3 }
 0x22a   : > { %v497_v6 = vadd.f32 1.0, %v699_v4 }
 0x22b   : > { %700 = vrcp.f32 %v496_v5 }
 0x22c   : > { %702 = vrcp.f32 %v497_v6 }
 0x235   : > { %v701_v12 = vpop.eup %700 }
 0x236   : > { %v703_v14 = vpop.eup %702 }
 0x237   : > { %v502_v15 = vcombine.low %v701_v12, %v703_v14 }
 0x239   : > { %v509_v16 = vrot.slane %v502_v15, %v508_v13 }
 0x23b   : > { %v516_v17 = vrot.slane %v509_v16, %v508_v13 }
 0x23d   : > { %v517_v18 = vcombine.high %v516_v17, %v516_v17 }
 0x23f   : > { %523 = vst.msk [vmem:[%s297_s15] sm:$0x3] %vm521_vm3, %v517_v18 }
 0x240   : > { %747 = shalt.err (!%p744_p3)
}
 0x241   : > { %s748_s10 = scalar_lea.hbm %s986_s23, 32  ;;  %s752_s9 = scalar_lea.hbm %s1037_s7, 64 }
 0x242   : > { %p749_p5 = scmp.ne.s32.totalorder %s986_s23, %s748_s10  ;;  %p753_p9 = scmp.lt.u32.totalorder %s986_s23, %s1037_s7 }
 0x243   : > { %p754_p0 = scmp.lt.u32.totalorder %s752_s9, %s748_s10  ;;  %p756_p6 = scmp.lt.u32.totalorder %s748_s10, %s986_s23 }
 0x244   : > { %p750_p7 = pnand %p749_p5, %p1044_p11 }
 0x245   : > { %p755_p2 = por %p754_p0, %p753_p9 }
 0x246   : > { %p751_p8 = pneg %p750_p7 }
 0x247   : > { %p757_p12 = por %p756_p6, %p755_p2 }
 0x249   : > { %p758_p13 = pnand %p757_p12, %p751_p8 }
 0x24b   : > { %761 = shalt.err (!%p758_p13)
}
 0x24c   : > { %637 = dma.vmem_to_hbm [thread:$0]  (%p1044_p11), %s988_s20, 32, %s986_s23, %s525_s24  }
 0x24d PF: > { %s551_s15 = sand.u32 1, %s788_s26   ;;  %p1045_p4 = scmp.ne.s32.totalorder %s1041_s14, 0 }
 0x24e   : > { %p1046_p10 = scmp.ge.s32.totalorder %s800_s29, 2  ;;  %s552_s21 = scalar_lea.sflag [#allocation5], %s551_s15 }
 0x250   : > { %p644_p1 = pnand %p1046_p10, %p1045_p4 }
 0x252   : > { %783 = dma.done.wait (!%p644_p1), %s552_s21, 32  }
 0x253   : > { %785 = vsyncadd (!%p644_p1), %s552_s21, 4294967264  ;;  %p21_p3 = scmp.ge.s32.totalorder %s877_s8, 4   ;;  %s1047_s26 = smov %s792_s27 }
 0x254   : > { %s1048_s27 = smov %s796_s28  ;;  %s1049_s28 = smov %s889_s11 }
 0x255   : > { %s1050_s29 = smov %s877_s8  ;;  %23 = sbr.rel (!%p21_p3) target bundleno = 7 (0x7), region = 93 }
 0x25c   :  { %557 = vsyncpa [#allocation4], 1 }
 0x25d   :  { %559 = vsyncpa [#allocation4 + $0x1], 1 }
 0x25e   :  { %560 = vsyncpa [#allocation5], 1 }
 0x25f   :  { %562 = vsyncpa [#allocation5 + $0x1], 1 }

</bundles_post_ra>
